<compile_context>
chip_gen: v7x
topology: tpu7x:2x2x1
jax: 0.10.0
libtpu: 0.0.40
codegen_flags: <defaults>
</compile_context>

<pallas_src>
import jax
import jax.numpy as jnp
from jax.experimental import pallas as pl
from jax.experimental.pallas import tpu as pltpu

# ---------------- model hyper-parameters (consistent with the module) -------
MAX_TYPES = 32            # N : number of entity types (graph nodes)
GAT_EMB = 16              # gat_emb_size == embedding_size
NHID = 3                  # GAT(gat_emb_size, 3, ...)
NHEADS = 1
FC1_OUT = 100
FC1_PAD = 128             # lane-padded fc1 width (sliced back to 100 outside)
ALPHA = 0.2               # LeakyReLU slope in GraphAttentionLayer
NEG_INF = -9e15
BATCH = 2                 # number of graphs in graph_rep


def state_network_forward(emb, adjs, w_gat, a_vec, w1t, b1):
    """emb: (N, F) f32; adjs: (B, N, N) i32; w_gat: (F, H); a_vec: (2H, 1);
       w1t: (N*H, 100) (transposed vs torch Linear.weight); b1: (100,).
       Returns (B, 100)."""
    N, F = emb.shape
    B = adjs.shape[0]
    H = NHID
    f32 = jnp.float32

    emb = emb.astype(f32)
    w_gat = w_gat.astype(f32)
    a_vec = a_vec.astype(f32)

    # --- weight-only / layout-only preprocessing (free in XLA) --------------
    # Rows 0..H-1 of (wcomb @ emb^T) give h^T; row H gives the f1 row.
    wcomb = jnp.concatenate([w_gat.T, (w_gat @ a_vec[:H]).T], axis=0)  # (H+1,F)
    wa2 = w_gat @ a_vec[H:]                                            # (F, 1)
    # Additive adjacency mask, pre-transposed so the in-kernel softmax
    # reduces over the sublane axis and att^T is produced directly.
    maskT = jnp.where(adjs > 0, 0.0, NEG_INF).astype(f32).transpose(0, 2, 1)
    # fc1 weights: pad 100->128 lanes and split per GAT channel so the torch
    # flatten order (flat[n*H + c]) becomes H clean (N, 128) weight slabs.
    w1_pad = jnp.pad(w1t.astype(f32), ((0, 0), (0, FC1_PAD - FC1_OUT)))
    w1_split = w1_pad.reshape(N, H, FC1_PAD).transpose(1, 0, 2)        # (H,N,128)
    b_pad = jnp.pad(b1.astype(f32), (0, FC1_PAD - FC1_OUT)).reshape(1, FC1_PAD)
    embT = emb.T                                                       # (F, N)

    def kernel(embT_ref, emb_ref, wcomb_ref, wa2_ref, maskT_ref, w1_ref, b_ref,
               out_ref):
        # ---- adjacency-independent GAT prologue (shared by whole batch) ----
        gmat = jnp.dot(wcomb_ref[...], embT_ref[...],
                       preferred_element_type=jnp.float32)       # (H+1, N)
        hT = gmat[:NHID, :]                                      # (H, N) = h^T
        f1_row = gmat[NHID:NHID + 1, :]                          # (1, N)
        f2_col = jnp.dot(emb_ref[...], wa2_ref[...],
                         preferred_element_type=jnp.float32)     # (N, 1)
        eT = f2_col + f1_row                                     # e^T  (N, N)
        eT = jnp.where(eT > 0, eT, ALPHA * eT)                   # LeakyReLU
        bias = b_ref[...]                                        # (1, 128)

        # ---- per-graph masked softmax + attention + fc1 (B=2 -> unrolled) --
        for g in range(BATCH):
            logitsT = eT + maskT_ref[g]                          # additive mask
            m = jnp.max(logitsT, axis=0, keepdims=True)          # (1, N)
            p = jnp.exp(logitsT - m)
            inv = pl.reciprocal(jnp.sum(p, axis=0, keepdims=True),
                                approx=True)                     # EUP slot
            attT = p * inv                                       # att^T (N, N)
            # hp^T[c, i] = sum_j h[j, c] * att[i, j]  -- standard matmul.
            hpt = jnp.dot(hT, attT,
                          preferred_element_type=jnp.float32)    # (H, N)
            hpt = jnp.where(hpt > 0.0, hpt, jnp.exp(hpt) - 1.0)  # ELU
            # fc1: ret[g, :] = sum_{n,c} hp[n,c] * W1[n*H+c, :] + bias
            acc = bias
            for c in range(NHID):
                acc = acc + jnp.dot(hpt[c:c + 1, :], w1_ref[c],
                                    preferred_element_type=jnp.float32)
            out_ref[g:g + 1, :] = acc                            # (1, 128)

    out = pl.pallas_call(
        kernel,
        out_shape=jax.ShapeDtypeStruct((B, FC1_PAD), jnp.float32),
        grid=(1,),
        in_specs=[
            pl.BlockSpec((F, N), lambda i: (0, 0)),              # emb^T
            pl.BlockSpec((N, F), lambda i: (0, 0)),              # emb
            pl.BlockSpec((H + 1, F), lambda i: (0, 0)),          # [W^T; (Wa1)^T]
            pl.BlockSpec((F, 1), lambda i: (0, 0)),              # W a2
            pl.BlockSpec((B, N, N), lambda i: (0, 0, 0)),        # mask^T bias
            pl.BlockSpec((H, N, FC1_PAD), lambda i: (0, 0, 0)),  # fc1 W split
            pl.BlockSpec((1, FC1_PAD), lambda i: (0, 0)),        # fc1 bias
        ],
        out_specs=pl.BlockSpec((B, FC1_PAD), lambda i: (0, 0)),
        compiler_params=pltpu.CompilerParams(
            dimension_semantics=("arbitrary",)),
    )(embT, emb, wcomb, wa2, maskT, w1_split, b_pad)
    return out[:, :FC1_OUT]


def reference_forward(emb, adjs, w_gat, a_vec, w1t, b1):
    """Plain-JAX reference of the PyTorch forward (eval/no-dropout)."""
    H = NHID
    h = emb @ w_gat                                      # (N, H)
    f1 = h @ a_vec[:H]                                   # (N, 1)
    f2 = h @ a_vec[H:]                                   # (N, 1)
    e = f1 + f2.T
    e = jnp.where(e > 0, e, ALPHA * e)
    rows = []
    for i in range(adjs.shape[0]):
        logits = jnp.where(adjs[i] > 0, e, NEG_INF)
        att = jax.nn.softmax(logits, axis=1)
        hp = att @ h
        hp = jnp.where(hp > 0, hp, jnp.exp(hp) - 1.0)    # ELU (concat=True)
        rows.append(hp.reshape(-1))                      # .view(-1)
    out = jnp.stack(rows)                                # (B, N*H)
    return out @ w1t + b1[None, :]


if __name__ == "__main__":
    key = jax.random.PRNGKey(0)
    k_emb, k_w, k_a, k_w1, k_b, k_adj = jax.random.split(key, 6)

    N, F, H = MAX_TYPES, GAT_EMB, NHID

    # Deterministic synthetic parameters (original init is zeros for the
    # embedding; use small random values so the compute is non-trivial).
    emb = jax.random.normal(k_emb, (N, F), jnp.float32) * 0.1
    w_gat = jax.random.normal(k_w, (F, H), jnp.float32) * 0.25
    a_vec = jax.random.normal(k_a, (2 * H, 1), jnp.float32) * 0.5
    w1t = jax.random.normal(k_w1, (N * H * NHEADS, FC1_OUT), jnp.float32) * 0.1
    b1 = jax.random.normal(k_b, (FC1_OUT,), jnp.float32) * 0.1

    # graph_rep ~ a batch of adjacency matrices (int32, with self-loops).
    adjs = (jax.random.uniform(k_adj, (BATCH, N, N)) > 0.7).astype(jnp.int32)
    adjs = jnp.maximum(adjs, jnp.eye(N, dtype=jnp.int32)[None])

    fwd = jax.jit(state_network_forward)
    out = jax.block_until_ready(fwd(emb, adjs, w_gat, a_vec, w1t, b1))

    ref = reference_forward(emb, adjs, w_gat, a_vec, w1t, b1)
    assert out.shape == (BATCH, FC1_OUT)
    assert jnp.allclose(out, ref, rtol=2e-2, atol=2e-2), (
        float(jnp.max(jnp.abs(out - ref))))

    print("KERNEL_OK")
</pallas_src>

<mosaic_0001>
module attributes {stable_mosaic.version = 11 : i64} {
  func.func @kernel(%arg0: i32, %arg1: memref<16x32xf32, #tpu.memory_space<vmem>>, %arg2: memref<32x16xf32, #tpu.memory_space<vmem>>, %arg3: memref<4x16xf32, #tpu.memory_space<vmem>>, %arg4: memref<16x1xf32, #tpu.memory_space<vmem>>, %arg5: memref<2x32x32xf32, #tpu.memory_space<vmem>>, %arg6: memref<3x32x128xf32, #tpu.memory_space<vmem>>, %arg7: memref<1x128xf32, #tpu.memory_space<vmem>>, %arg8: memref<2x128xf32, #tpu.memory_space<vmem>>) attributes {dimension_semantics = [#tpu.dimension_semantics<arbitrary>], iteration_bounds = array<i64: 1>, scalar_prefetch = 0 : i64, scratch_operands = 0 : i64, tpu.core_type = #tpu.core_type<tc>, window_params = [{pipeline_mode = #tpu.pipeline_mode<synchronous>, transform_indices = @transform_0, window_bounds = array<i64: 16, 32>}, {pipeline_mode = #tpu.pipeline_mode<synchronous>, transform_indices = @transform_1, window_bounds = array<i64: 32, 16>}, {pipeline_mode = #tpu.pipeline_mode<synchronous>, transform_indices = @transform_2, window_bounds = array<i64: 4, 16>}, {pipeline_mode = #tpu.pipeline_mode<synchronous>, transform_indices = @transform_3, window_bounds = array<i64: 16, 1>}, {pipeline_mode = #tpu.pipeline_mode<synchronous>, transform_indices = @transform_4, window_bounds = array<i64: 2, 32, 32>}, {pipeline_mode = #tpu.pipeline_mode<synchronous>, transform_indices = @transform_5, window_bounds = array<i64: 3, 32, 128>}, {pipeline_mode = #tpu.pipeline_mode<synchronous>, transform_indices = @transform_6, window_bounds = array<i64: 1, 128>}, {pipeline_mode = #tpu.pipeline_mode<synchronous>, transform_indices = @transform_7, window_bounds = array<i64: 2, 128>}]} {
    %c0 = arith.constant 0 : index
    %c0_0 = arith.constant 0 : index
    %0 = vector.load %arg3[%c0, %c0_0] : memref<4x16xf32, #tpu.memory_space<vmem>>, vector<4x16xf32>
    %c0_1 = arith.constant 0 : index
    %c0_2 = arith.constant 0 : index
    %1 = vector.load %arg1[%c0_1, %c0_2] : memref<16x32xf32, #tpu.memory_space<vmem>>, vector<16x32xf32>
    %cst = arith.constant dense<0.000000e+00> : vector<4x32xf32>
    %2 = tpu.matmul %0, %1, %cst {dimension_numbers = #tpu.dot_dimension_numbers<[1], [0], [0], [1], [0, 0, 1, 1], [], []>} : vector<4x16xf32>, vector<16x32xf32>, vector<4x32xf32> -> vector<4x32xf32>
    %3 = vector.extract_strided_slice %2 {offsets = [0, 0], sizes = [3, 32], strides = [1, 1]} : vector<4x32xf32> to vector<3x32xf32>
    %4 = vector.extract_strided_slice %2 {offsets = [3, 0], sizes = [1, 32], strides = [1, 1]} : vector<4x32xf32> to vector<1x32xf32>
    %c0_3 = arith.constant 0 : index
    %c0_4 = arith.constant 0 : index
    %5 = vector.load %arg2[%c0_3, %c0_4] : memref<32x16xf32, #tpu.memory_space<vmem>>, vector<32x16xf32>
    %c0_5 = arith.constant 0 : index
    %c0_6 = arith.constant 0 : index
    %6 = vector.load %arg4[%c0_5, %c0_6] : memref<16x1xf32, #tpu.memory_space<vmem>>, vector<16x1xf32>
    %cst_7 = arith.constant dense<0.000000e+00> : vector<32x1xf32>
    %7 = tpu.matmul %5, %6, %cst_7 {dimension_numbers = #tpu.dot_dimension_numbers<[1], [0], [0], [1], [0, 0, 1, 1], [], []>} : vector<32x16xf32>, vector<16x1xf32>, vector<32x1xf32> -> vector<32x1xf32>
    %8 = vector.broadcast %7 : vector<32x1xf32> to vector<32x32xf32>
    %9 = vector.broadcast %4 : vector<1x32xf32> to vector<32x32xf32>
    %10 = arith.addf %8, %9 : vector<32x32xf32>
    %cst_8 = arith.constant 0.000000e+00 : f32
    %11 = vector.broadcast %cst_8 : f32 to vector<32x32xf32>
    %12 = arith.cmpf ogt, %10, %11 : vector<32x32xf32>
    %cst_9 = arith.constant 2.000000e-01 : f32
    %13 = vector.broadcast %cst_9 : f32 to vector<32x32xf32>
    %14 = arith.mulf %13, %10 : vector<32x32xf32>
    %15 = arith.select %12, %10, %14 : vector<32x32xi1>, vector<32x32xf32>
    %c0_10 = arith.constant 0 : index
    %c0_11 = arith.constant 0 : index
    %16 = vector.load %arg7[%c0_10, %c0_11] : memref<1x128xf32, #tpu.memory_space<vmem>>, vector<1x128xf32>
    %c0_12 = arith.constant 0 : index
    %c0_13 = arith.constant 0 : index
    %c0_14 = arith.constant 0 : index
    %17 = vector.load %arg5[%c0_12, %c0_13, %c0_14] : memref<2x32x32xf32, #tpu.memory_space<vmem>>, vector<1x32x32xf32>
    %18 = vector.shape_cast %17 : vector<1x32x32xf32> to vector<32x32xf32>
    %19 = arith.addf %15, %18 : vector<32x32xf32>
    %cst_15 = arith.constant dense<0xFF800000> : vector<32xf32>
    %20 = vector.multi_reduction <maximumf>, %19, %cst_15 [0] : vector<32x32xf32> to vector<32xf32>
    %21 = vector.shape_cast %20 : vector<32xf32> to vector<1x32xf32>
    %22 = vector.broadcast %21 : vector<1x32xf32> to vector<32x32xf32>
    %23 = arith.subf %19, %22 : vector<32x32xf32>
    %24 = math.exp %23 : vector<32x32xf32>
    %cst_16 = arith.constant dense<0.000000e+00> : vector<32xf32>
    %25 = vector.multi_reduction <add>, %24, %cst_16 [0] : vector<32x32xf32> to vector<32xf32>
    %26 = vector.shape_cast %25 : vector<32xf32> to vector<1x32xf32>
    %27 = tpu.reciprocal %26 {approx = true} : vector<1x32xf32> -> vector<1x32xf32>
    %28 = vector.broadcast %27 : vector<1x32xf32> to vector<32x32xf32>
    %29 = arith.mulf %24, %28 : vector<32x32xf32>
    %cst_17 = arith.constant dense<0.000000e+00> : vector<3x32xf32>
    %30 = tpu.matmul %3, %29, %cst_17 {dimension_numbers = #tpu.dot_dimension_numbers<[1], [0], [0], [1], [0, 0, 1, 1], [], []>} : vector<3x32xf32>, vector<32x32xf32>, vector<3x32xf32> -> vector<3x32xf32>
    %cst_18 = arith.constant 0.000000e+00 : f32
    %31 = vector.broadcast %cst_18 : f32 to vector<3x32xf32>
    %32 = arith.cmpf ogt, %30, %31 : vector<3x32xf32>
    %33 = math.exp %30 : vector<3x32xf32>
    %cst_19 = arith.constant 1.000000e+00 : f32
    %34 = vector.broadcast %cst_19 : f32 to vector<3x32xf32>
    %35 = arith.subf %33, %34 : vector<3x32xf32>
    %36 = arith.select %32, %30, %35 : vector<3x32xi1>, vector<3x32xf32>
    %37 = vector.extract_strided_slice %36 {offsets = [0, 0], sizes = [1, 32], strides = [1, 1]} : vector<3x32xf32> to vector<1x32xf32>
    %c0_20 = arith.constant 0 : index
    %c0_21 = arith.constant 0 : index
    %c0_22 = arith.constant 0 : index
    %38 = vector.load %arg6[%c0_20, %c0_21, %c0_22] : memref<3x32x128xf32, #tpu.memory_space<vmem>>, vector<1x32x128xf32>
    %39 = vector.shape_cast %38 : vector<1x32x128xf32> to vector<32x128xf32>
    %cst_23 = arith.constant dense<0.000000e+00> : vector<1x128xf32>
    %40 = tpu.matmul %37, %39, %cst_23 {dimension_numbers = #tpu.dot_dimension_numbers<[1], [0], [0], [1], [0, 0, 1, 1], [], []>} : vector<1x32xf32>, vector<32x128xf32>, vector<1x128xf32> -> vector<1x128xf32>
    %41 = arith.addf %16, %40 : vector<1x128xf32>
    %42 = vector.extract_strided_slice %36 {offsets = [1, 0], sizes = [1, 32], strides = [1, 1]} : vector<3x32xf32> to vector<1x32xf32>
    %c1 = arith.constant 1 : index
    %c0_24 = arith.constant 0 : index
    %c0_25 = arith.constant 0 : index
    %43 = vector.load %arg6[%c1, %c0_24, %c0_25] : memref<3x32x128xf32, #tpu.memory_space<vmem>>, vector<1x32x128xf32>
    %44 = vector.shape_cast %43 : vector<1x32x128xf32> to vector<32x128xf32>
    %cst_26 = arith.constant dense<0.000000e+00> : vector<1x128xf32>
    %45 = tpu.matmul %42, %44, %cst_26 {dimension_numbers = #tpu.dot_dimension_numbers<[1], [0], [0], [1], [0, 0, 1, 1], [], []>} : vector<1x32xf32>, vector<32x128xf32>, vector<1x128xf32> -> vector<1x128xf32>
    %46 = arith.addf %41, %45 : vector<1x128xf32>
    %47 = vector.extract_strided_slice %36 {offsets = [2, 0], sizes = [1, 32], strides = [1, 1]} : vector<3x32xf32> to vector<1x32xf32>
    %c2 = arith.constant 2 : index
    %c0_27 = arith.constant 0 : index
    %c0_28 = arith.constant 0 : index
    %48 = vector.load %arg6[%c2, %c0_27, %c0_28] : memref<3x32x128xf32, #tpu.memory_space<vmem>>, vector<1x32x128xf32>
    %49 = vector.shape_cast %48 : vector<1x32x128xf32> to vector<32x128xf32>
    %cst_29 = arith.constant dense<0.000000e+00> : vector<1x128xf32>
    %50 = tpu.matmul %47, %49, %cst_29 {dimension_numbers = #tpu.dot_dimension_numbers<[1], [0], [0], [1], [0, 0, 1, 1], [], []>} : vector<1x32xf32>, vector<32x128xf32>, vector<1x128xf32> -> vector<1x128xf32>
    %51 = arith.addf %46, %50 : vector<1x128xf32>
    %c0_30 = arith.constant 0 : index
    %c0_31 = arith.constant 0 : index
    %52 = vector.load %arg8[%c0_30, %c0_31] : memref<2x128xf32, #tpu.memory_space<vmem>>, vector<1x128xf32>
    tpu.vector_store %arg8[%c0_30, %c0_31], %51 {strides = array<i32>} : memref<2x128xf32, #tpu.memory_space<vmem>>, vector<1x128xf32>,
    %c1_32 = arith.constant 1 : index
    %c0_33 = arith.constant 0 : index
    %c0_34 = arith.constant 0 : index
    %53 = vector.load %arg5[%c1_32, %c0_33, %c0_34] : memref<2x32x32xf32, #tpu.memory_space<vmem>>, vector<1x32x32xf32>
    %54 = vector.shape_cast %53 : vector<1x32x32xf32> to vector<32x32xf32>
    %55 = arith.addf %15, %54 : vector<32x32xf32>
    %cst_35 = arith.constant dense<0xFF800000> : vector<32xf32>
    %56 = vector.multi_reduction <maximumf>, %55, %cst_35 [0] : vector<32x32xf32> to vector<32xf32>
    %57 = vector.shape_cast %56 : vector<32xf32> to vector<1x32xf32>
    %58 = vector.broadcast %57 : vector<1x32xf32> to vector<32x32xf32>
    %59 = arith.subf %55, %58 : vector<32x32xf32>
    %60 = math.exp %59 : vector<32x32xf32>
    %cst_36 = arith.constant dense<0.000000e+00> : vector<32xf32>
    %61 = vector.multi_reduction <add>, %60, %cst_36 [0] : vector<32x32xf32> to vector<32xf32>
    %62 = vector.shape_cast %61 : vector<32xf32> to vector<1x32xf32>
    %63 = tpu.reciprocal %62 {approx = true} : vector<1x32xf32> -> vector<1x32xf32>
    %64 = vector.broadcast %63 : vector<1x32xf32> to vector<32x32xf32>
    %65 = arith.mulf %60, %64 : vector<32x32xf32>
    %cst_37 = arith.constant dense<0.000000e+00> : vector<3x32xf32>
    %66 = tpu.matmul %3, %65, %cst_37 {dimension_numbers = #tpu.dot_dimension_numbers<[1], [0], [0], [1], [0, 0, 1, 1], [], []>} : vector<3x32xf32>, vector<32x32xf32>, vector<3x32xf32> -> vector<3x32xf32>
    %cst_38 = arith.constant 0.000000e+00 : f32
    %67 = vector.broadcast %cst_38 : f32 to vector<3x32xf32>
    %68 = arith.cmpf ogt, %66, %67 : vector<3x32xf32>
    %69 = math.exp %66 : vector<3x32xf32>
    %cst_39 = arith.constant 1.000000e+00 : f32
    %70 = vector.broadcast %cst_39 : f32 to vector<3x32xf32>
    %71 = arith.subf %69, %70 : vector<3x32xf32>
    %72 = arith.select %68, %66, %71 : vector<3x32xi1>, vector<3x32xf32>
    %73 = vector.extract_strided_slice %72 {offsets = [0, 0], sizes = [1, 32], strides = [1, 1]} : vector<3x32xf32> to vector<1x32xf32>
    %c0_40 = arith.constant 0 : index
    %c0_41 = arith.constant 0 : index
    %c0_42 = arith.constant 0 : index
    %74 = vector.load %arg6[%c0_40, %c0_41, %c0_42] : memref<3x32x128xf32, #tpu.memory_space<vmem>>, vector<1x32x128xf32>
    %75 = vector.shape_cast %74 : vector<1x32x128xf32> to vector<32x128xf32>
    %cst_43 = arith.constant dense<0.000000e+00> : vector<1x128xf32>
    %76 = tpu.matmul %73, %75, %cst_43 {dimension_numbers = #tpu.dot_dimension_numbers<[1], [0], [0], [1], [0, 0, 1, 1], [], []>} : vector<1x32xf32>, vector<32x128xf32>, vector<1x128xf32> -> vector<1x128xf32>
    %77 = arith.addf %16, %76 : vector<1x128xf32>
    %78 = vector.extract_strided_slice %72 {offsets = [1, 0], sizes = [1, 32], strides = [1, 1]} : vector<3x32xf32> to vector<1x32xf32>
    %c1_44 = arith.constant 1 : index
    %c0_45 = arith.constant 0 : index
    %c0_46 = arith.constant 0 : index
    %79 = vector.load %arg6[%c1_44, %c0_45, %c0_46] : memref<3x32x128xf32, #tpu.memory_space<vmem>>, vector<1x32x128xf32>
    %80 = vector.shape_cast %79 : vector<1x32x128xf32> to vector<32x128xf32>
    %cst_47 = arith.constant dense<0.000000e+00> : vector<1x128xf32>
    %81 = tpu.matmul %78, %80, %cst_47 {dimension_numbers = #tpu.dot_dimension_numbers<[1], [0], [0], [1], [0, 0, 1, 1], [], []>} : vector<1x32xf32>, vector<32x128xf32>, vector<1x128xf32> -> vector<1x128xf32>
    %82 = arith.addf %77, %81 : vector<1x128xf32>
    %83 = vector.extract_strided_slice %72 {offsets = [2, 0], sizes = [1, 32], strides = [1, 1]} : vector<3x32xf32> to vector<1x32xf32>
    %c2_48 = arith.constant 2 : index
    %c0_49 = arith.constant 0 : index
    %c0_50 = arith.constant 0 : index
    %84 = vector.load %arg6[%c2_48, %c0_49, %c0_50] : memref<3x32x128xf32, #tpu.memory_space<vmem>>, vector<1x32x128xf32>
    %85 = vector.shape_cast %84 : vector<1x32x128xf32> to vector<32x128xf32>
    %cst_51 = arith.constant dense<0.000000e+00> : vector<1x128xf32>
    %86 = tpu.matmul %83, %85, %cst_51 {dimension_numbers = #tpu.dot_dimension_numbers<[1], [0], [0], [1], [0, 0, 1, 1], [], []>} : vector<1x32xf32>, vector<32x128xf32>, vector<1x128xf32> -> vector<1x128xf32>
    %87 = arith.addf %82, %86 : vector<1x128xf32>
    %c1_52 = arith.constant 1 : index
    %c0_53 = arith.constant 0 : index
    %88 = vector.load %arg8[%c1_52, %c0_53] : memref<2x128xf32, #tpu.memory_space<vmem>>, vector<1x128xf32>
    tpu.vector_store %arg8[%c1_52, %c0_53], %87 {strides = array<i32>} : memref<2x128xf32, #tpu.memory_space<vmem>>, vector<1x128xf32>,
    return
  }
  func.func @transform_0(%arg0: i32) -> (i32, i32) {
    %c0_i32 = arith.constant 0 : i32
    %c0_i32_0 = arith.constant 0 : i32
    %c0_i32_1 = arith.constant 0 : i32
    return %c0_i32, %c0_i32_0 : i32, i32
  }
  func.func @transform_1(%arg0: i32) -> (i32, i32) {
    %c0_i32 = arith.constant 0 : i32
    %c0_i32_0 = arith.constant 0 : i32
    %c0_i32_1 = arith.constant 0 : i32
    return %c0_i32, %c0_i32_0 : i32, i32
  }
  func.func @transform_2(%arg0: i32) -> (i32, i32) {
    %c0_i32 = arith.constant 0 : i32
    %c0_i32_0 = arith.constant 0 : i32
    %c0_i32_1 = arith.constant 0 : i32
    return %c0_i32, %c0_i32_0 : i32, i32
  }
  func.func @transform_3(%arg0: i32) -> (i32, i32) {
    %c0_i32 = arith.constant 0 : i32
    %c0_i32_0 = arith.constant 0 : i32
    %c0_i32_1 = arith.constant 0 : i32
    return %c0_i32, %c0_i32_0 : i32, i32
  }
  func.func @transform_4(%arg0: i32) -> (i32, i32, i32) {
    %c0_i32 = arith.constant 0 : i32
    %c0_i32_0 = arith.constant 0 : i32
    %c0_i32_1 = arith.constant 0 : i32
    %c0_i32_2 = arith.constant 0 : i32
    return %c0_i32, %c0_i32_0, %c0_i32_1 : i32, i32, i32
  }
  func.func @transform_5(%arg0: i32) -> (i32, i32, i32) {
    %c0_i32 = arith.constant 0 : i32
    %c0_i32_0 = arith.constant 0 : i32
    %c0_i32_1 = arith.constant 0 : i32
    %c0_i32_2 = arith.constant 0 : i32
    return %c0_i32, %c0_i32_0, %c0_i32_1 : i32, i32, i32
  }
  func.func @transform_6(%arg0: i32) -> (i32, i32) {
    %c0_i32 = arith.constant 0 : i32
    %c0_i32_0 = arith.constant 0 : i32
    %c0_i32_1 = arith.constant 0 : i32
    return %c0_i32, %c0_i32_0 : i32, i32
  }
  func.func @transform_7(%arg0: i32) -> (i32, i32) {
    %c0_i32 = arith.constant 0 : i32
    %c0_i32_0 = arith.constant 0 : i32
    %c0_i32_1 = arith.constant 0 : i32
    return %c0_i32, %c0_i32_0 : i32, i32
  }
}

</mosaic_0001>

<bundles_post_ra>
// kernel: state_network_forward.1
= control target key start
LH: loop header
LB: loop body
LE: loop exit
PB: predicated region body
PF: predicated region fallthrough
CT: control target
= control target key end

     0   :  { %vm30_vm0 = vcmask 130048   ;;  %v1300_v4 = vmov 0.0|0.0   ;;  %vm1301_vm1 = vmmov 0   ;;  %v1302_v7 = vmov 0.0   ;;  %s1516_s0 = inlined_call_operand.vmem [shape: f32[16,32], index: 0, kind: input, shape index: {}]   ;;  %s1517_s1 = inlined_call_operand.vmem [shape: f32[32,16], index: 1, kind: input, shape index: {}]   ;;  %s1518_s2 = inlined_call_operand.vmem [shape: f32[4,16], index: 2, kind: input, shape index: {}]   ;;  %s1519_s3 = inlined_call_operand.vmem [shape: f32[16,1], index: 3, kind: input, shape index: {}]   ;;  %s1520_s4 = inlined_call_operand.vmem [shape: f32[2,32,32], index: 4, kind: input, shape index: {}]   ;;  %s1521_s5 = inlined_call_operand.vmem [shape: f32[3,32,128], index: 5, kind: input, shape index: {}]   ;;  %s1522_s6 = inlined_call_operand.vmem [shape: f32[1,128], index: 6, kind: input, shape index: {}]   ;;  %s1523_s7 = inlined_call_operand.hbm [shape: f32[2,128], index: 7, kind: output, shape index: {}]  }
   0x1   :  { %v108_v0 = vld [vmem:[%s1519_s3] sm:$0xff]  ;;  %v109_v1 = vld [vmem:[%s1519_s3 + $0x8] sm:$0xff]  ;;  %1180 = vmatprep.subr.bf16.mxu0 %v1300_v4  ;;  %1079 = vmatprep.mubr.msk.f32.mxu0 %vm1301_vm1, %v1302_v7 }
   0x2   :  { %v104_v2 = vld [vmem:[%s1517_s1] sm:$0xff]  ;;  %v1183_v3 = vpack.c.bf16 %v109_v1, %v108_v0  ;;  %v29_v6 = vld [vmem:[%s1516_s0 + $0x8] sm:$0xff] }
   0x3   :  { %1086 = vmatprep.mubr.msk.f32.mxu1 %vm30_vm0, %v104_v2  ;;  %v28_v5 = vld [vmem:[%s1516_s0] sm:$0xff] }
   0x4   :  { %1184 = vmatprep.subr.bf16.mxu1 %v1183_v3  ;;  %v1181_v8 = vpack.c.bf16 %v29_v6, %v28_v5 }
   0x5   :  { %12 = vsyncpa [#allocation3], 0  ;;  %1186 = vmatpush3.bf16.msra.mxu1 %v1183_v3  ;;  %v105_v9 = vld [vmem:[%s1517_s1 + $0x8] sm:$0xff]  ;;  %v106_v10 = vld [vmem:[%s1517_s1 + $0x10] sm:$0xff]  ;;  %v1303_v13 = vmov 0   ;;  %v227_v20 = vlaneseq  ;;  %vm256_vm6 = vcmask 261120  }
   0x6   :  { %1182 = vmatpush3.bf16.msra.mxu0 %v1181_v8  ;;  %v27_v11 = vld [vmem:[%s1518_s2] sm:$0xf]  ;;  %1187 = vmatprep.subr.bf16.mxu1 %v1300_v4  ;;  %v107_v12 = vld [vmem:[%s1517_s1 + $0x18] sm:$0xff]  ;;  %v249_v31 = vld [vmem:[%s1520_s4 + $0x8] sm:$0xff]  ;;  %s1304_s28 = smov [#allocation2]  }
   0x7   :  { %1211 = vmatprep.subr.bf16.mxu0 %v1300_v4  ;;  %1250 = vset.pattern.permute.xlu0 %v1303_v13  ;;  %v228_v21 = vshrl.u32 %v227_v20, 7  ;;  %v1010_v32 = vld [vmem:[%s1520_s4 + $0x28] sm:$0xff]  ;;  %v248_v35 = vld [vmem:[%s1520_s4] sm:$0xff]  ;;  %v250_v40 = vld [vmem:[%s1520_s4 + $0x10] sm:$0xff]  ;;  %s983_s29 = sshll.u32 %s1304_s28, 4  ;;  %s984_s29 = int_to_ptr.vmem [resolvable:$true] %s983_s29 }
   0x8   :  { %1087 = vmatmul.mubr.msk.f32.vlgmr.msra.gmra.mrb[0].mxu1 %vm30_vm0, %v105_v9  ;;  %1251 = vset.pattern.permute.xlu1 %v1303_v13  ;;  %v1009_v36 = vld [vmem:[%s1520_s4 + $0x20] sm:$0xff]  ;;  %v1011_v41 = vld [vmem:[%s1520_s4 + $0x30] sm:$0xff]  ;;  %v251_v48 = vld [vmem:[%s1520_s4 + $0x18] sm:$0xff]  ;;  %s1276_s30 = scalar_lea.vmem %s984_s29, 32  ;;  %p1281_p1 = scmp.lt.s32.totalorder %s984_s29, %s984_s29 }
   0x9   :  { %1089 = vmatprep.mubr.msk.f32.mxu1 %vm30_vm0, %v106_v10  ;;  %1080 = vmatmul.mubr.msk.f32.vlgmr.msra.gmra.mrb[0].mxu0 %vm30_vm0, %v27_v11  ;;  %v229_v22 = vsub.s32 3, %v228_v21  ;;  %v1012_v49 = vld [vmem:[%s1520_s4 + $0x38] sm:$0xff]  ;;  %p1277_p0 = scmp.ne.s32.totalorder %s984_s29, %s1276_s30  ;;  %p1282_p2 = scmp.lt.s32.totalorder %s1276_s30, %s1276_s30 }
   0xa   :  { %1144 = vmatprep.mubr.msk.f32.mxu0 %vm1301_vm1, %v1302_v7 }
   0xb   :  { %p1283_p3 = por %p1282_p2, %p1281_p1 }
   0xc   :  { %1090 = vmatmul.mubr.msk.f32.gmra.mrb[2].mxu1 %vm30_vm0, %v107_v12 }
   0xd   :  { %1100 = vmatprep.mubr.msk.f32.mxu1 %vm1301_vm1, %v1302_v7  ;;  %p1284_p4 = pnand %p1283_p3, %p1277_p0 }
  0xdb   :  { %v1088_v14 = vpop.f32.mrb[0].mxu1 }
  0xdc   :  { %v188_v15 = vpop.f32.mrb[1].mxu1  ;;  %v1386_v16 = vpop.f32.mrb[0].mxu0 }
  0xdd   :  { %209 = vperm.xlu0 %1250, %v188_v15   ;;  %v1081_v17 = vpop.f32.mrb[1].mxu0  ;;  %v230_v23 = vrot.slane %v1386_v16, %v229_v22 }
  0xdf   :  { %v1091_v18 = vpop.f32.mrb[2].mxu1 }
  0xe0   :  { %v198_v19 = vpop.f32.mrb[3].mxu1 }
  0xe1   :  { %214 = vperm.xlu0 %1250, %v1088_v14   ;;  %219 = vperm.xlu1 %1251, %v198_v19  }
  0xe5   :  { %224 = vperm.xlu1 %1251, %v1091_v18  }
 0x15c   :  { %v210_v24 = vpop.permute.xlu0 %209 }
 0x15d   :  { %v231_v25 = vadd.f32 %v230_v23, %v210_v24 }
 0x15f   :  { %v239_v26 = vmul.f32 0.2, %v231_v25  ;;  %vm235_vm2 = vcmp.gt.f32.partialorder %v231_v25, 0.0 }
 0x160   :  { %v215_v27 = vpop.permute.xlu0 %214  ;;  %v220_v28 = vpop.permute.xlu1 %219 }
 0x161   :  { %v232_v29 = vadd.f32 %v230_v23, %v215_v27  ;;  %v233_v30 = vadd.f32 %v230_v23, %v220_v28  ;;  %v243_v37 = vsel %vm235_vm2, %v231_v25, %v239_v26 }
 0x162   :  { %v252_v46 = vadd.f32 %v248_v35, %v243_v37  ;;  %v620_v47 = vadd.f32 %v1009_v36, %v243_v37 }
 0x163   :  { %vm236_vm3 = vcmp.gt.f32.partialorder %v232_v29, 0.0  ;;  %v240_v33 = vmul.f32 0.2, %v232_v29  ;;  %vm237_vm4 = vcmp.gt.f32.partialorder %v233_v30, 0.0  ;;  %v241_v34 = vmul.f32 0.2, %v233_v30 }
 0x164   :  { %v225_v38 = vpop.permute.xlu1 %224  ;;  %v257_v58 = vsel %vm256_vm6, %v252_v46, -inf  ;;  %v624_v59 = vsel %vm256_vm6, %v620_v47, -inf }
 0x165   :  { %v244_v39 = vsel %vm236_vm3, %v232_v29, %v240_v33  ;;  %v245_v42 = vsel %vm237_vm4, %v233_v30, %v241_v34  ;;  %v234_v43 = vadd.f32 %v230_v23, %v225_v38 }
 0x166   :  { %v253_v44 = vadd.f32 %v249_v31, %v244_v39  ;;  %v621_v45 = vadd.f32 %v1010_v32, %v244_v39  ;;  %v254_v51 = vadd.f32 %v250_v40, %v245_v42  ;;  %v622_v52 = vadd.f32 %v1011_v41, %v245_v42 }
 0x167   :  { %vm238_vm5 = vcmp.gt.f32.partialorder %v234_v43, 0.0  ;;  %v242_v50 = vmul.f32 0.2, %v234_v43 }
 0x168   :  { %v258_v54 = vsel %vm256_vm6, %v253_v44, -inf  ;;  %v625_v55 = vsel %vm256_vm6, %v621_v45, -inf  ;;  %v259_v60 = vsel %vm256_vm6, %v254_v51, -inf  ;;  %v626_v61 = vsel %vm256_vm6, %v622_v52, -inf }
 0x169   :  { %v246_v53 = vsel %vm238_vm5, %v234_v43, %v242_v50  ;;  %v261_v0 = vmax.f32 %v257_v58, %v258_v54  ;;  %v628_v1 = vmax.f32 %v624_v59, %v625_v55 }
 0x16a   :  { %v255_v56 = vadd.f32 %v251_v48, %v246_v53  ;;  %v623_v57 = vadd.f32 %v1012_v49, %v246_v53 }
 0x16c   :  { %v260_v62 = vsel %vm256_vm6, %v255_v56, -inf  ;;  %v627_v63 = vsel %vm256_vm6, %v623_v57, -inf }
 0x16d   :  { %v262_v2 = vmax.f32 %v259_v60, %v260_v62  ;;  %v629_v3 = vmax.f32 %v626_v61, %v627_v63 }
 0x16f   :  { %v263_v5 = vmax.f32 %v261_v0, %v262_v2  ;;  %v630_v6 = vmax.f32 %v628_v1, %v629_v3 }
 0x171   :  { %v264_v8 = vrot.slane %v263_v5, 4  ;;  %v631_v9 = vrot.slane %v630_v6, 4 }
 0x173   :  { %v265_v10 = vmax.f32 %v263_v5, %v264_v8  ;;  %v632_v11 = vmax.f32 %v630_v6, %v631_v9 }
 0x175   :  { %v266_v12 = vrot.slane %v265_v10, 2  ;;  %v633_v13 = vrot.slane %v632_v11, 2 }
 0x177   :  { %v267_v14 = vmax.f32 %v265_v10, %v266_v12  ;;  %v634_v15 = vmax.f32 %v632_v11, %v633_v13 }
 0x179   :  { %v268_v17 = vrot.slane %v267_v14, 1  ;;  %v635_v18 = vrot.slane %v634_v15, 1 }
 0x17b   :  { %v269_v19 = vmax.f32 %v267_v14, %v268_v17  ;;  %v636_v20 = vmax.f32 %v634_v15, %v635_v18 }
 0x17d   :  { %v272_v21 = vsub.f32 %v254_v51, %v269_v19  ;;  %v273_v22 = vsub.f32 %v255_v56, %v269_v19  ;;  %v639_v23 = vsub.f32 %v622_v52, %v636_v20  ;;  %v270_v24 = vsub.f32 %v252_v46, %v269_v19 }
 0x17e   :  { %v271_v25 = vsub.f32 %v253_v44, %v269_v19  ;;  %v637_v28 = vsub.f32 %v620_v47, %v636_v20  ;;  %v638_v30 = vsub.f32 %v621_v45, %v636_v20  ;;  %v640_v32 = vsub.f32 %v623_v57, %v636_v20 }
 0x17f   :  { %v278_v26 = vmul.f32 1.442695, %v272_v21  ;;  %v280_v27 = vmul.f32 1.442695, %v273_v22  ;;  %v645_v29 = vmul.f32 1.442695, %v639_v23 }
 0x180   :  { %v274_v31 = vmul.f32 1.442695, %v270_v24  ;;  %v276_v33 = vmul.f32 1.442695, %v271_v25  ;;  %v641_v34 = vmul.f32 1.442695, %v637_v28 }
 0x181   :  { %1252 = vpow2.f32 %v278_v26  ;;  %v643_v35 = vmul.f32 1.442695, %v638_v30  ;;  %v647_v36 = vmul.f32 1.442695, %v640_v32  ;;  %v378_v24 = vld [vmem:[%s1521_s5] sm:$0xff]  ;;  %v379_v25 = vld [vmem:[%s1521_s5 + $0x8] sm:$0xff] }
 0x182   :  { %1254 = vpow2.f32 %v280_v27  ;;  %v1194_v26 = vpack.c.bf16 %v379_v25, %v378_v24  ;;  %v381_v27 = vld [vmem:[%s1521_s5 + $0x18] sm:$0xff] }
 0x183   :  { %1256 = vpow2.f32 %v645_v29 }
 0x184   :  { %1258 = vpow2.f32 %v274_v31 }
 0x185   :  { %1260 = vpow2.f32 %v276_v33 }
 0x186   :  { %1262 = vpow2.f32 %v641_v34 }
 0x187   :  { %1264 = vpow2.f32 %v643_v35  ;;  %v999_v35 = vld [vmem:[%s1521_s5 + $0x20] sm:$0xff] }
 0x188   :  { %1266 = vpow2.f32 %v647_v36  ;;  %v1000_v36 = vld [vmem:[%s1521_s5 + $0x28] sm:$0xff] }
 0x18b   :  { %v1253_v37 = vpop.eup %1252 }
 0x18c   :  { %v1255_v38 = vpop.eup %1254  ;;  %v285_v48 = vsel %vm256_vm6, %v1253_v37, 0.0 }
 0x18d   :  { %v1257_v39 = vpop.eup %1256  ;;  %v287_v53 = vsel %vm256_vm6, %v1255_v38, 0.0 }
 0x18e   :  { %v1259_v40 = vpop.eup %1258  ;;  %v652_v54 = vsel %vm256_vm6, %v1257_v39, 0.0 }
 0x18f   :  { %v1261_v41 = vpop.eup %1260  ;;  %v282_v42 = vsel %vm256_vm6, %v1259_v40, 0.0 }
 0x190   :  { %v1263_v43 = vpop.eup %1262  ;;  %v283_v44 = vsel %vm256_vm6, %v1261_v41, 0.0 }
 0x191   :  { %v1265_v45 = vpop.eup %1264  ;;  %v284_v46 = vadd.f32 %v283_v44, %v282_v42  ;;  %v649_v47 = vsel %vm256_vm6, %v1263_v43, 0.0  ;;  %v1002_v42 = vld [vmem:[%s1521_s5 + $0x38] sm:$0xff] }
 0x192   :  { %v650_v49 = vsel %vm256_vm6, %v1265_v45, 0.0  ;;  %v1267_v50 = vpop.eup %1266 }
 0x193   :  { %v286_v51 = vadd.f32 %v285_v48, %v284_v46  ;;  %v651_v52 = vadd.f32 %v650_v49, %v649_v47  ;;  %v654_v57 = vsel %vm256_vm6, %v1267_v50, 0.0  ;;  %v1004_v47 = vld [vmem:[%s1521_s5 + $0x40] sm:$0xff]  ;;  %v1005_v48 = vld [vmem:[%s1521_s5 + $0x48] sm:$0xff] }
 0x194   :  { %v1206_v49 = vpack.c.bf16 %v1005_v48, %v1004_v47 }
 0x195   :  { %v288_v55 = vadd.f32 %v287_v53, %v286_v51  ;;  %v653_v56 = vadd.f32 %v652_v54, %v651_v52  ;;  %v1006_v51 = vld [vmem:[%s1521_s5 + $0x50] sm:$0xff]  ;;  %v1007_v52 = vld [vmem:[%s1521_s5 + $0x58] sm:$0xff] }
 0x196   :  { %v1209_v54 = vpack.c.bf16 %v1007_v52, %v1006_v51 }
 0x197   :  { %v289_v58 = vrot.slane %v288_v55, 4  ;;  %v655_v59 = vadd.f32 %v654_v57, %v653_v56  ;;  %v247_v57 = vld [vmem:[%s1522_s6] sm:$0x1] }
 0x199   :  { %v290_v60 = vadd.f32 %v289_v58, %v288_v55  ;;  %v656_v61 = vrot.slane %v655_v59, 4 }
 0x19b   :  { %v291_v62 = vrot.slane %v290_v60, 2  ;;  %v657_v63 = vadd.f32 %v656_v61, %v655_v59 }
 0x19d   :  { %v292_v0 = vadd.f32 %v291_v62, %v290_v60  ;;  %v658_v1 = vrot.slane %v657_v63, 2 }
 0x19f   :  { %v293_v2 = vrot.slane %v292_v0, 1  ;;  %v659_v3 = vadd.f32 %v658_v1, %v657_v63 }
 0x1a1   :  { %v294_v5 = vadd.f32 %v293_v2, %v292_v0  ;;  %v660_v6 = vrot.slane %v659_v3, 1 }
 0x1a3   :  { %1268 = vrcp.f32 %v294_v5  ;;  %v661_v8 = vadd.f32 %v660_v6, %v659_v3 }
 0x1a5   :  { %1270 = vrcp.f32 %v661_v8 }
 0x1ad   :  { %v1269_v9 = vpop.eup %1268 }
 0x1ae   :  { %v296_v10 = vmul.f32 %v1269_v9, %v1259_v40  ;;  %v297_v11 = vmul.f32 %v1269_v9, %v1261_v41  ;;  %v298_v13 = vmul.f32 %v1269_v9, %v1253_v37  ;;  %v299_v18 = vmul.f32 %v1269_v9, %v1255_v38  ;;  %v1001_v41 = vld [vmem:[%s1521_s5 + $0x30] sm:$0xff] }
 0x1af   :  { %v1271_v12 = vpop.eup %1270  ;;  %v1203_v46 = vpack.c.bf16 %v1002_v42, %v1001_v41 }
 0x1b0   :  { %v1188_v14 = vpack.c.bf16 %v297_v11, %v296_v10  ;;  %v663_v15 = vmul.f32 %v1271_v12, %v1263_v43  ;;  %v664_v17 = vmul.f32 %v1271_v12, %v1265_v45  ;;  %v665_v20 = vmul.f32 %v1271_v12, %v1257_v39 }
 0x1b1   :  { %v666_v21 = vmul.f32 %v1271_v12, %v1267_v50  ;;  %v1191_v22 = vpack.c.bf16 %v299_v18, %v298_v13  ;;  %v1200_v39 = vpack.c.bf16 %v1000_v36, %v999_v35 }
 0x1b2   :  { %1189 = vmatpush3.bf16.msra.mxu1 %v1188_v14  ;;  %v1212_v19 = vpack.c.bf16 %v664_v17, %v663_v15 }
 0x1b3   :  { %1190 = vmatprep.subr.bf16.mxu1 %v1300_v4  ;;  %v1215_v23 = vpack.c.bf16 %v666_v21, %v665_v20 }
 0x1b4   :  { %1213 = vmatpush3.bf16.msra.mxu0 %v1212_v19 }
 0x1b5   :  { %1214 = vmatprep.subr.bf16.mxu0 %v1300_v4 }
 0x1b6   :  { %1192 = vmatpush3.bf16.msra.mxu1 %v1191_v22 }
 0x1b7   :  { %1193 = vmatprep.subr.bf16.mxu1 %v1300_v4 }
 0x1b8   :  { %1216 = vmatpush3.bf16.msra.mxu0 %v1215_v23 }
 0x1b9   :  { %1101 = vmatmul.mubr.msk.f32.vlgmr.msra.gmra.mrb[4].mxu1 %vm256_vm6, %v1386_v16  ;;  %1217 = vmatprep.subr.bf16.mxu0 %v1300_v4 }
 0x1ba   :  { %1111 = vmatprep.mubr.msk.f32.mxu1 %vm1301_vm1, %v1302_v7  ;;  %1195 = vmatpush3.bf16.msra.mxu1 %v1194_v26 }
 0x1bb   :  { %1145 = vmatmul.mubr.msk.f32.vlgmr.msra.gmra.mrb[2].mxu0 %vm256_vm6, %v1386_v16  ;;  %1196 = vmatprep.subr.bf16.mxu1 %v1300_v4  ;;  %v380_v16 = vld [vmem:[%s1521_s5 + $0x10] sm:$0xff] }
 0x1bc   :  { %1155 = vmatprep.mubr.msk.f32.mxu0 %vm1301_vm1, %v1302_v7  ;;  %1219 = vmatpush3.bf16.msra.mxu0 %v1194_v26  ;;  %v1197_v28 = vpack.c.bf16 %v381_v27, %v380_v16 }
 0x1bd   :  { %1220 = vmatprep.subr.bf16.mxu0 %v1300_v4 }
 0x1be   :  { %1198 = vmatpush3.bf16.msra.mxu1 %v1197_v28 }
 0x1bf   :  { %1199 = vmatprep.subr.bf16.mxu1 %v1300_v4 }
 0x1c0   :  { %1222 = vmatpush3.bf16.msra.mxu0 %v1197_v28 }
 0x1c1   :  { %1223 = vmatprep.subr.bf16.mxu0 %v1300_v4 }
 0x28c   :  { %v369_v29 = vpop.f32.mrb[4].mxu1 }
 0x28d   :  { %v374_v30 = vmul.f32 1.442695, %v369_v29  ;;  %v1102_v31 = vpop.f32.mrb[5].mxu1  ;;  %vm373_vm7 = vcmp.gt.f32.partialorder %v369_v29, 0.0 }
 0x28e   :  { %v733_v32 = vpop.f32.mrb[2].mxu0 }
 0x28f   :  { %1272 = vpow2.f32 %v374_v30  ;;  %v738_v33 = vmul.f32 1.442695, %v733_v32  ;;  %v1146_v34 = vpop.f32.mrb[3].mxu0  ;;  %vm737_vm8 = vcmp.gt.f32.partialorder %v733_v32, 0.0 }
 0x291   :  { %1274 = vpow2.f32 %v738_v33 }
 0x299   :  { %v1273_v37 = vpop.eup %1272 }
 0x29a   :  { %v997_v38 = vadd.f32 -1.0, %v1273_v37 }
 0x29b   :  { %v1275_v40 = vpop.eup %1274 }
 0x29c   :  { %v377_v43 = vsel %vm373_vm7, %v369_v29, %v997_v38  ;;  %v1014_v44 = vadd.f32 -1.0, %v1275_v40 }
 0x29d   :  { %1112 = vmatmul.mubr.msk.f32.vlgmr.msra.gmra.mrb[6].mxu1 %vm256_vm6, %v377_v43  ;;  %v461_v50 = vrot.slane %v377_v43, 1  ;;  %v540_v55 = vrot.slane %v377_v43, 2 }
 0x29e   :  { %v741_v45 = vsel %vm737_vm8, %v733_v32, %v1014_v44  ;;  %1201 = vmatpush3.bf16.msra.mxu1 %v1200_v39  ;;  %1122 = vmatprep.mubr.msk.f32.mxu1 %vm1301_vm1, %v1302_v7 }
 0x29f   :  { %1156 = vmatmul.mubr.msk.f32.vlgmr.msra.gmra.mrb[4].mxu0 %vm256_vm6, %v741_v45  ;;  %1202 = vmatprep.subr.bf16.mxu1 %v1300_v4  ;;  %v824_v53 = vrot.slane %v741_v45, 1  ;;  %v902_v56 = vrot.slane %v741_v45, 2 }
 0x2a0   :  { %1225 = vmatpush3.bf16.msra.mxu0 %v1200_v39  ;;  %1166 = vmatprep.mubr.msk.f32.mxu0 %vm1301_vm1, %v1302_v7 }
 0x2a1   :  { %1226 = vmatprep.subr.bf16.mxu0 %v1300_v4 }
 0x2a2   :  { %1204 = vmatpush3.bf16.msra.mxu1 %v1203_v46 }
 0x2a3   :  { %1205 = vmatprep.subr.bf16.mxu1 %v1300_v4 }
 0x2a4   :  { %1228 = vmatpush3.bf16.msra.mxu0 %v1203_v46 }
 0x2a5   :  { %1123 = vmatmul.mubr.msk.f32.vlgmr.msra.gmra.mrb[6].mxu1 %vm256_vm6, %v461_v50  ;;  %1229 = vmatprep.subr.bf16.mxu0 %v1300_v4 }
 0x2a6   :  { %1207 = vmatpush3.bf16.msra.mxu1 %v1206_v49  ;;  %1133 = vmatprep.mubr.msk.f32.mxu1 %vm1301_vm1, %v1302_v7 }
 0x2a7   :  { %1167 = vmatmul.mubr.msk.f32.vlgmr.msra.gmra.mrb[4].mxu0 %vm256_vm6, %v824_v53  ;;  %1208 = vmatprep.subr.bf16.mxu1 %v1300_v4 }
 0x2a8   :  { %1231 = vmatpush3.bf16.msra.mxu0 %v1206_v49  ;;  %1177 = vmatprep.mubr.msk.f32.mxu0 %vm1301_vm1, %v1302_v7 }
 0x2a9   :  { %1232 = vmatprep.subr.bf16.mxu0 %v1300_v4 }
 0x2aa   :  { %1210 = vmatpush3.bf16.msra.mxu1 %v1209_v54 }
 0x2ac   :  { %1234 = vmatpush3.bf16.msra.mxu0 %v1209_v54 }
 0x2ad   :  { %1134 = vmatmul.mubr.msk.f32.vlgmr.msra.gmra.mrb[6].mxu1 %vm256_vm6, %v540_v55 }
 0x2af   :  { %1178 = vmatmul.mubr.msk.f32.vlgmr.msra.gmra.mrb[4].mxu0 %vm256_vm6, %v902_v56 }
 0x380   :  { %v609_v58 = vpop.f32.mrb[6].mxu1 }
 0x381   :  { %v1235_v59 = vadd.f32 %v609_v58, %v247_v57  ;;  %v1135_v60 = vpop.f32.mrb[7].mxu1 }
 0x382   :  { %v971_v7 = vpop.f32.mrb[4].mxu0 }
 0x383   :  { %614 = vst [vmem:[#allocation2] sm:$0x1] %v1235_v59  ;;  %v1236_v4 = vadd.f32 %v971_v7, %v247_v57  ;;  %v1179_v61 = vpop.f32.mrb[5].mxu0 }
 0x385   :  { %976 = vst [vmem:[#allocation2 + $0x1] sm:$0x1] %v1236_v4 }
 0x386   :  { %1287 = shalt.err (!%p1284_p4)
}
 0x387   :  { %s1288_s8 = scalar_lea.hbm %s1523_s7, 32 }
 0x388   :  { %p1289_p5 = scmp.ne.s32.totalorder %s1523_s7, %s1288_s8  ;;  %p1292_p6 = scmp.lt.u32.totalorder %s1288_s8, %s1523_s7 }
 0x38a   :  { %p1294_p7 = pnand %p1292_p6, %p1289_p5 }
 0x38c   :  { %1297 = shalt.err (!%p1294_p7)
}
 0x38d   :  { %986 = dma.vmem_to_hbm [thread:$0]  %s984_s29, 32, %s1523_s7, [#allocation3]  }
 0x38e   :  { %1298 = dma.done.wait [#allocation3], 32  }
 0x38f   :  { %1299 = vsyncadd [#allocation3], 4294967264 }
 0x390   :  { %990 = vsyncpa [#allocation3], 1 }

</bundles_post_ra>
